<compile_context>
chip_gen: v7x
topology: tpu7x:2x2x1
jax: 0.10.0
libtpu: 0.0.40
codegen_flags: <defaults>
</compile_context>

<pallas_src>
import functools

import jax
import jax.numpy as jnp
from jax import lax
from jax.experimental import pallas as pl
from jax.experimental.pallas import tpu as pltpu


def _make_lstm_kernel(t_chunk, hidden, seq_len, seq_pad, unroll):
    """Builds the streamed LSTM-recurrence kernel (all sizes static / closed over)."""
    H = hidden
    needs_mask = seq_pad != seq_len  # padded seq chunks must not update h/c

    def kernel(pregates_ref, whh_ref, h_out_ref, h_scr, c_scr):
        # pregates_ref : (t_chunk, B_TILE, 4H)  streamed per grid step (mxu dtype)
        # whh_ref      : (H, 4H)                resident (constant index_map)
        # h_out_ref    : (B_TILE, H) f32        written only at the last seq chunk
        # h_scr/c_scr  : (B_TILE, H) f32        state carried across seq chunks
        s_idx = pl.program_id(1)

        @pl.when(s_idx == 0)
        def _():
            h_scr[...] = jnp.zeros_like(h_scr)
            c_scr[...] = jnp.zeros_like(c_scr)

        whh = whh_ref[...]                      # stays resident across all grid steps
        base_t = s_idx * t_chunk

        def step(t, carry):
            h, c = carry
            # Only the recurrent matmul sits on the serial critical path.
            # TODO(synk): at production batch, pack enough independent sequences that
            # M >= 128/256 (MXU rows); optionally drive the MXU explicitly with
            # pltpu.matmul_push_rhs once + matmul_acc_lhs per step (RHS is constant).
            rec = jnp.dot(h.astype(whh.dtype), whh,
                          preferred_element_type=jnp.float32)
            gates = pregates_ref[t].astype(jnp.float32) + rec      # f32 gate math
            # NOTE: at toy H (<128) these slices are intra-vreg lane extracts; at
            # production H (multiple of 128) they are vreg-aligned -- left as is.
            i_g = jax.nn.sigmoid(gates[:, 0 * H:1 * H])
            f_g = jax.nn.sigmoid(gates[:, 1 * H:2 * H])
            g_g = jnp.tanh(gates[:, 2 * H:3 * H])
            o_g = jax.nn.sigmoid(gates[:, 3 * H:4 * H])
            c_new = f_g * c + i_g * g_g
            h_new = o_g * jnp.tanh(c_new)
            if needs_mask:
                valid = (base_t + t) < seq_len
                h_new = jnp.where(valid, h_new, h)
                c_new = jnp.where(valid, c_new, c)
            return (h_new, c_new)

        h_f, c_f = lax.fori_loop(0, t_chunk, step,
                                 (h_scr[...], c_scr[...]), unroll=unroll)
        h_scr[...] = h_f
        c_scr[...] = c_f

        @pl.when(s_idx == pl.num_programs(1) - 1)
        def _():
            h_out_ref[...] = h_f.astype(h_out_ref.dtype)

    return kernel


def encoder_rnn_forward(inputs, emb_table, w_ih, w_hh, b_ih, b_hh,
                        *, mxu_dtype=jnp.float32):
    """inputs: (B, S) int32 token ids. Returns final hidden state (B, H) f32.

    mxu_dtype:
      f32  -> numerically faithful to the PyTorch module.
      bf16 -> halves streamed-pregate DMA bytes and runs the MXU at native bf16 rate
              on v6e/v7x; f32 accumulation and f32 gate elementwise math are kept.
    """
    B, S = inputs.shape
    H = emb_table.shape[1]
    f32 = jnp.float32

    # --- glue (wrapper-side XLA): embedding gather + dropout(identity, eval mode) ---
    # TODO(synk): training-mode dropout RNG masking (pltpu.prng_*) not reproduced.
    x_sbd = jnp.take(emb_table, inputs.T, axis=0)                    # (S, B, H)

    wih_t = jnp.transpose(w_ih).astype(f32)                          # (H, 4H)
    whh_t = jnp.transpose(w_hh).astype(mxu_dtype)                    # (H, 4H)
    bias = (b_ih + b_hh).astype(f32)

    # Input projection hoisted off the serial path: one (S*B, H) @ (H, 4H) matmul.
    pregates = (x_sbd.reshape(S * B, H).astype(f32) @ wih_t
                ).reshape(S, B, 4 * H) + bias                        # (S, B, 4H) f32
    pregates = pregates.astype(mxu_dtype)        # streamed dtype (bf16 halves DMA)

    # --- tiling / padding ---
    itemsize = jnp.dtype(mxu_dtype).itemsize
    # Pad batch to 16 sublanes (bf16 packs 16 rows per vreg; covers f32's 8 too).
    Bp = max(16, ((B + 15) // 16) * 16)
    B_TILE = min(Bp, 256)                        # per-core batch tile (v7x megacore)
    Bp = ((Bp + B_TILE - 1) // B_TILE) * B_TILE
    n_btiles = Bp // B_TILE

    # Seq-chunk size from a double-buffered pregate budget (fits v7x 64 MiB VMEM,
    # v5e/v6e trivially) rather than making the whole (S, Bp, 4H) slab resident.
    PREGATE_BUDGET = 16 * 1024 * 1024
    bytes_per_step = B_TILE * 4 * H * itemsize
    t_chunk = int(max(1, min(S, PREGATE_BUDGET // (2 * bytes_per_step))))
    S_pad = ((S + t_chunk - 1) // t_chunk) * t_chunk
    n_schunks = S_pad // t_chunk
    unroll = int(min(t_chunk, 8))                # partial unroll, not full

    if Bp != B or S_pad != S:
        pregates = jnp.pad(pregates, ((0, S_pad - S), (0, Bp - B), (0, 0)))

    vmem_needed = (2 * t_chunk * B_TILE * 4 * H * itemsize   # double-buffered pregates
                   + 2 * H * 4 * H * itemsize                # W_hh^T (buffered)
                   + 2 * 2 * B_TILE * H * 4                  # h/c scratch
                   + 2 * B_TILE * H * 4)                     # output block
    vmem_limit = int(min(max(2 * vmem_needed, 32 * 1024 * 1024), 48 * 1024 * 1024))

    kernel = _make_lstm_kernel(t_chunk, H, S, S_pad, unroll)

    h_final_p = pl.pallas_call(
        kernel,
        out_shape=jax.ShapeDtypeStruct((Bp, H), f32),
        grid=(n_btiles, n_schunks),
        in_specs=[
            # pregates: streamed over the seq axis (double-buffered DMA overlap).
            pl.BlockSpec((t_chunk, B_TILE, 4 * H), lambda b, s: (s, b, 0)),
            # W_hh^T: constant index_map -> resident in VMEM across the whole call.
            pl.BlockSpec((H, 4 * H), lambda b, s: (0, 0)),
        ],
        out_specs=pl.BlockSpec((B_TILE, H), lambda b, s: (b, 0)),
        scratch_shapes=[
            pltpu.VMEM((B_TILE, H), f32),    # h carry
            pltpu.VMEM((B_TILE, H), f32),    # c carry
        ],
        compiler_params=pltpu.CompilerParams(
            dimension_semantics=("parallel", "arbitrary"),
            vmem_limit_bytes=vmem_limit,
        ),
    )(pregates, whh_t)

    return h_final_p[:B]


def encoder_rnn_reference(inputs, emb_table, w_ih, w_hh, b_ih, b_hh):
    """Pure-JAX f32 reference mirroring torch.nn.LSTMCell semantics."""
    B, S = inputs.shape
    H = emb_table.shape[1]
    embedded = jnp.take(emb_table, inputs, axis=0)  # (B, S, H)

    def step(carry, x_t):
        h, c = carry
        gates = x_t @ w_ih.T + b_ih + h @ w_hh.T + b_hh
        i = jax.nn.sigmoid(gates[:, 0 * H:1 * H])
        f = jax.nn.sigmoid(gates[:, 1 * H:2 * H])
        g = jnp.tanh(gates[:, 2 * H:3 * H])
        o = jax.nn.sigmoid(gates[:, 3 * H:4 * H])
        c_new = f * c + i * g
        h_new = o * jnp.tanh(c_new)
        return (h_new, c_new), None

    h0 = jnp.zeros((B, H), jnp.float32)
    c0 = jnp.zeros((B, H), jnp.float32)
    (h_final, _), _ = jax.lax.scan(step, (h0, c0), jnp.transpose(embedded, (1, 0, 2)))
    return h_final


if __name__ == "__main__":
    VOCAB = 50
    HIDDEN = 32
    BATCH = 2
    SEQ = 8

    key = jax.random.PRNGKey(0)
    k_emb, k_wih, k_whh, k_bih, k_bhh, k_tok = jax.random.split(key, 6)

    # Deterministic synthetic parameters (shapes follow nn.Embedding / nn.LSTMCell).
    emb_table = jax.random.normal(k_emb, (VOCAB, HIDDEN), jnp.float32) * 0.1
    w_ih = jax.random.normal(k_wih, (4 * HIDDEN, HIDDEN), jnp.float32) * 0.1
    w_hh = jax.random.normal(k_whh, (4 * HIDDEN, HIDDEN), jnp.float32) * 0.1
    b_ih = jax.random.normal(k_bih, (4 * HIDDEN,), jnp.float32) * 0.1
    b_hh = jax.random.normal(k_bhh, (4 * HIDDEN,), jnp.float32) * 0.1

    tokens = jax.random.randint(k_tok, (BATCH, SEQ), 0, VOCAB, dtype=jnp.int32)

    ref = jax.block_until_ready(
        encoder_rnn_reference(tokens, emb_table, w_ih, w_hh, b_ih, b_hh))

    # Faithful f32 path (matches PyTorch-module numerics).
    fwd_f32 = jax.jit(functools.partial(encoder_rnn_forward, mxu_dtype=jnp.float32))
    out_f32 = jax.block_until_ready(fwd_f32(tokens, emb_table, w_ih, w_hh, b_ih, b_hh))
    assert out_f32.shape == (BATCH, HIDDEN)
    assert jnp.allclose(out_f32, ref, atol=1e-4, rtol=1e-4), (
        f"f32 path max abs diff {jnp.max(jnp.abs(out_f32 - ref))}")

    # bf16-MXU path (perf configuration for v6e/v7x): f32 accumulation + f32 gate
    # elementwise math are retained, so only the operand rounding differs.
    fwd_bf16 = jax.jit(functools.partial(encoder_rnn_forward, mxu_dtype=jnp.bfloat16))
    out_bf16 = jax.block_until_ready(fwd_bf16(tokens, emb_table, w_ih, w_hh, b_ih, b_hh))
    assert out_bf16.shape == (BATCH, HIDDEN)
    assert jnp.allclose(out_bf16, ref, atol=2e-2, rtol=2e-2), (
        f"bf16 path max abs diff {jnp.max(jnp.abs(out_bf16 - ref))}")

    print("KERNEL_OK")
</pallas_src>

<mosaic_0001>
module attributes {stable_mosaic.version = 11 : i64} {
  func.func @kernel(%arg0: i32, %arg1: i32, %arg2: memref<8x16x128xf32, #tpu.memory_space<vmem>>, %arg3: memref<32x128xf32, #tpu.memory_space<vmem>>, %arg4: memref<16x32xf32, #tpu.memory_space<vmem>>, %arg5: memref<16x32xf32, #tpu.memory_space<vmem>>, %arg6: memref<16x32xf32, #tpu.memory_space<vmem>>) attributes {dimension_semantics = [#tpu.dimension_semantics<parallel>, #tpu.dimension_semantics<arbitrary>], iteration_bounds = array<i64: 1, 1>, scalar_prefetch = 0 : i64, scratch_operands = 2 : i64, tpu.core_type = #tpu.core_type<tc>, window_params = [{transform_indices = @transform_0, window_bounds = array<i64: 8, 16, 128>}, {pipeline_mode = #tpu.pipeline_mode<synchronous>, transform_indices = @transform_1, window_bounds = array<i64: 32, 128>}, {transform_indices = @transform_2, window_bounds = array<i64: 16, 32>}]} {
    %c0_i32 = arith.constant 0 : i32
    %0 = arith.cmpi eq, %arg1, %c0_i32 : i32
    %1 = arith.extui %0 : i1 to i32
    %c0_i32_0 = arith.constant 0 : i32
    %2 = arith.cmpi ne, %1, %c0_i32_0 : i32
    scf.if %2 {
      %cst_60 = arith.constant 0.000000e+00 : f32
      %251 = vector.broadcast %cst_60 : f32 to vector<16x32xf32>
      %c0_61 = arith.constant 0 : index
      %c0_62 = arith.constant 0 : index
      %252 = vector.load %arg5[%c0_61, %c0_62] : memref<16x32xf32, #tpu.memory_space<vmem>>, vector<16x32xf32>
      tpu.vector_store %arg5[%c0_61, %c0_62], %251 {strides = array<i32>} : memref<16x32xf32, #tpu.memory_space<vmem>>, vector<16x32xf32>,
      %cst_63 = arith.constant 0.000000e+00 : f32
      %253 = vector.broadcast %cst_63 : f32 to vector<16x32xf32>
      %c0_64 = arith.constant 0 : index
      %c0_65 = arith.constant 0 : index
      %254 = vector.load %arg6[%c0_64, %c0_65] : memref<16x32xf32, #tpu.memory_space<vmem>>, vector<16x32xf32>
      tpu.vector_store %arg6[%c0_64, %c0_65], %253 {strides = array<i32>} : memref<16x32xf32, #tpu.memory_space<vmem>>, vector<16x32xf32>,
    } else {
    }
    %c0 = arith.constant 0 : index
    %c0_1 = arith.constant 0 : index
    %3 = vector.load %arg3[%c0, %c0_1] : memref<32x128xf32, #tpu.memory_space<vmem>>, vector<32x128xf32>
    %c0_2 = arith.constant 0 : index
    %c0_3 = arith.constant 0 : index
    %4 = vector.load %arg5[%c0_2, %c0_3] : memref<16x32xf32, #tpu.memory_space<vmem>>, vector<16x32xf32>
    %c0_4 = arith.constant 0 : index
    %c0_5 = arith.constant 0 : index
    %5 = vector.load %arg6[%c0_4, %c0_5] : memref<16x32xf32, #tpu.memory_space<vmem>>, vector<16x32xf32>
    %c0_i32_6 = arith.constant 0 : i32
    %cst = arith.constant dense<0.000000e+00> : vector<16x128xf32>
    %6 = tpu.matmul %4, %3, %cst {dimension_numbers = #tpu.dot_dimension_numbers<[1], [0], [0], [1], [0, 0, 1, 1], [], []>} : vector<16x32xf32>, vector<32x128xf32>, vector<16x128xf32> -> vector<16x128xf32>
    %7 = arith.index_cast %c0_i32_6 : i32 to index
    %c0_7 = arith.constant 0 : index
    %c0_8 = arith.constant 0 : index
    %8 = vector.load %arg2[%7, %c0_7, %c0_8] : memref<8x16x128xf32, #tpu.memory_space<vmem>>, vector<1x16x128xf32>
    %9 = vector.shape_cast %8 : vector<1x16x128xf32> to vector<16x128xf32>
    %10 = arith.addf %9, %6 : vector<16x128xf32>
    %11 = vector.extract_strided_slice %10 {offsets = [0, 0], sizes = [16, 32], strides = [1, 1]} : vector<16x128xf32> to vector<16x32xf32>
    %12 = arith.negf %11 : vector<16x32xf32>
    %13 = math.exp %12 : vector<16x32xf32>
    %cst_9 = arith.constant 1.000000e+00 : f32
    %14 = vector.broadcast %cst_9 : f32 to vector<16x32xf32>
    %15 = arith.addf %14, %13 : vector<16x32xf32>
    %16 = arith.divf %14, %15 : vector<16x32xf32>
    %17 = vector.extract_strided_slice %10 {offsets = [0, 32], sizes = [16, 32], strides = [1, 1]} : vector<16x128xf32> to vector<16x32xf32>
    %18 = arith.negf %17 : vector<16x32xf32>
    %19 = math.exp %18 : vector<16x32xf32>
    %cst_10 = arith.constant 1.000000e+00 : f32
    %20 = vector.broadcast %cst_10 : f32 to vector<16x32xf32>
    %21 = arith.addf %20, %19 : vector<16x32xf32>
    %22 = arith.divf %20, %21 : vector<16x32xf32>
    %23 = vector.extract_strided_slice %10 {offsets = [0, 64], sizes = [16, 32], strides = [1, 1]} : vector<16x128xf32> to vector<16x32xf32>
    %24 = math.tanh %23 : vector<16x32xf32>
    %25 = vector.extract_strided_slice %10 {offsets = [0, 96], sizes = [16, 32], strides = [1, 1]} : vector<16x128xf32> to vector<16x32xf32>
    %26 = arith.negf %25 : vector<16x32xf32>
    %27 = math.exp %26 : vector<16x32xf32>
    %cst_11 = arith.constant 1.000000e+00 : f32
    %28 = vector.broadcast %cst_11 : f32 to vector<16x32xf32>
    %29 = arith.addf %28, %27 : vector<16x32xf32>
    %30 = arith.divf %28, %29 : vector<16x32xf32>
    %31 = arith.mulf %22, %5 : vector<16x32xf32>
    %32 = arith.mulf %16, %24 : vector<16x32xf32>
    %33 = arith.addf %31, %32 : vector<16x32xf32>
    %34 = math.tanh %33 : vector<16x32xf32>
    %35 = arith.mulf %30, %34 : vector<16x32xf32>
    %c1_i32 = arith.constant 1 : i32
    %cst_12 = arith.constant dense<0.000000e+00> : vector<16x128xf32>
    %36 = tpu.matmul %35, %3, %cst_12 {dimension_numbers = #tpu.dot_dimension_numbers<[1], [0], [0], [1], [0, 0, 1, 1], [], []>} : vector<16x32xf32>, vector<32x128xf32>, vector<16x128xf32> -> vector<16x128xf32>
    %37 = arith.index_cast %c1_i32 : i32 to index
    %c0_13 = arith.constant 0 : index
    %c0_14 = arith.constant 0 : index
    %38 = vector.load %arg2[%37, %c0_13, %c0_14] : memref<8x16x128xf32, #tpu.memory_space<vmem>>, vector<1x16x128xf32>
    %39 = vector.shape_cast %38 : vector<1x16x128xf32> to vector<16x128xf32>
    %40 = arith.addf %39, %36 : vector<16x128xf32>
    %41 = vector.extract_strided_slice %40 {offsets = [0, 0], sizes = [16, 32], strides = [1, 1]} : vector<16x128xf32> to vector<16x32xf32>
    %42 = arith.negf %41 : vector<16x32xf32>
    %43 = math.exp %42 : vector<16x32xf32>
    %cst_15 = arith.constant 1.000000e+00 : f32
    %44 = vector.broadcast %cst_15 : f32 to vector<16x32xf32>
    %45 = arith.addf %44, %43 : vector<16x32xf32>
    %46 = arith.divf %44, %45 : vector<16x32xf32>
    %47 = vector.extract_strided_slice %40 {offsets = [0, 32], sizes = [16, 32], strides = [1, 1]} : vector<16x128xf32> to vector<16x32xf32>
    %48 = arith.negf %47 : vector<16x32xf32>
    %49 = math.exp %48 : vector<16x32xf32>
    %cst_16 = arith.constant 1.000000e+00 : f32
    %50 = vector.broadcast %cst_16 : f32 to vector<16x32xf32>
    %51 = arith.addf %50, %49 : vector<16x32xf32>
    %52 = arith.divf %50, %51 : vector<16x32xf32>
    %53 = vector.extract_strided_slice %40 {offsets = [0, 64], sizes = [16, 32], strides = [1, 1]} : vector<16x128xf32> to vector<16x32xf32>
    %54 = math.tanh %53 : vector<16x32xf32>
    %55 = vector.extract_strided_slice %40 {offsets = [0, 96], sizes = [16, 32], strides = [1, 1]} : vector<16x128xf32> to vector<16x32xf32>
    %56 = arith.negf %55 : vector<16x32xf32>
    %57 = math.exp %56 : vector<16x32xf32>
    %cst_17 = arith.constant 1.000000e+00 : f32
    %58 = vector.broadcast %cst_17 : f32 to vector<16x32xf32>
    %59 = arith.addf %58, %57 : vector<16x32xf32>
    %60 = arith.divf %58, %59 : vector<16x32xf32>
    %61 = arith.mulf %52, %33 : vector<16x32xf32>
    %62 = arith.mulf %46, %54 : vector<16x32xf32>
    %63 = arith.addf %61, %62 : vector<16x32xf32>
    %64 = math.tanh %63 : vector<16x32xf32>
    %65 = arith.mulf %60, %64 : vector<16x32xf32>
    %c2_i32 = arith.constant 2 : i32
    %cst_18 = arith.constant dense<0.000000e+00> : vector<16x128xf32>
    %66 = tpu.matmul %65, %3, %cst_18 {dimension_numbers = #tpu.dot_dimension_numbers<[1], [0], [0], [1], [0, 0, 1, 1], [], []>} : vector<16x32xf32>, vector<32x128xf32>, vector<16x128xf32> -> vector<16x128xf32>
    %67 = arith.index_cast %c2_i32 : i32 to index
    %c0_19 = arith.constant 0 : index
    %c0_20 = arith.constant 0 : index
    %68 = vector.load %arg2[%67, %c0_19, %c0_20] : memref<8x16x128xf32, #tpu.memory_space<vmem>>, vector<1x16x128xf32>
    %69 = vector.shape_cast %68 : vector<1x16x128xf32> to vector<16x128xf32>
    %70 = arith.addf %69, %66 : vector<16x128xf32>
    %71 = vector.extract_strided_slice %70 {offsets = [0, 0], sizes = [16, 32], strides = [1, 1]} : vector<16x128xf32> to vector<16x32xf32>
    %72 = arith.negf %71 : vector<16x32xf32>
    %73 = math.exp %72 : vector<16x32xf32>
    %cst_21 = arith.constant 1.000000e+00 : f32
    %74 = vector.broadcast %cst_21 : f32 to vector<16x32xf32>
    %75 = arith.addf %74, %73 : vector<16x32xf32>
    %76 = arith.divf %74, %75 : vector<16x32xf32>
    %77 = vector.extract_strided_slice %70 {offsets = [0, 32], sizes = [16, 32], strides = [1, 1]} : vector<16x128xf32> to vector<16x32xf32>
    %78 = arith.negf %77 : vector<16x32xf32>
    %79 = math.exp %78 : vector<16x32xf32>
    %cst_22 = arith.constant 1.000000e+00 : f32
    %80 = vector.broadcast %cst_22 : f32 to vector<16x32xf32>
    %81 = arith.addf %80, %79 : vector<16x32xf32>
    %82 = arith.divf %80, %81 : vector<16x32xf32>
    %83 = vector.extract_strided_slice %70 {offsets = [0, 64], sizes = [16, 32], strides = [1, 1]} : vector<16x128xf32> to vector<16x32xf32>
    %84 = math.tanh %83 : vector<16x32xf32>
    %85 = vector.extract_strided_slice %70 {offsets = [0, 96], sizes = [16, 32], strides = [1, 1]} : vector<16x128xf32> to vector<16x32xf32>
    %86 = arith.negf %85 : vector<16x32xf32>
    %87 = math.exp %86 : vector<16x32xf32>
    %cst_23 = arith.constant 1.000000e+00 : f32
    %88 = vector.broadcast %cst_23 : f32 to vector<16x32xf32>
    %89 = arith.addf %88, %87 : vector<16x32xf32>
    %90 = arith.divf %88, %89 : vector<16x32xf32>
    %91 = arith.mulf %82, %63 : vector<16x32xf32>
    %92 = arith.mulf %76, %84 : vector<16x32xf32>
    %93 = arith.addf %91, %92 : vector<16x32xf32>
    %94 = math.tanh %93 : vector<16x32xf32>
    %95 = arith.mulf %90, %94 : vector<16x32xf32>
    %c3_i32 = arith.constant 3 : i32
    %cst_24 = arith.constant dense<0.000000e+00> : vector<16x128xf32>
    %96 = tpu.matmul %95, %3, %cst_24 {dimension_numbers = #tpu.dot_dimension_numbers<[1], [0], [0], [1], [0, 0, 1, 1], [], []>} : vector<16x32xf32>, vector<32x128xf32>, vector<16x128xf32> -> vector<16x128xf32>
    %97 = arith.index_cast %c3_i32 : i32 to index
    %c0_25 = arith.constant 0 : index
    %c0_26 = arith.constant 0 : index
    %98 = vector.load %arg2[%97, %c0_25, %c0_26] : memref<8x16x128xf32, #tpu.memory_space<vmem>>, vector<1x16x128xf32>
    %99 = vector.shape_cast %98 : vector<1x16x128xf32> to vector<16x128xf32>
    %100 = arith.addf %99, %96 : vector<16x128xf32>
    %101 = vector.extract_strided_slice %100 {offsets = [0, 0], sizes = [16, 32], strides = [1, 1]} : vector<16x128xf32> to vector<16x32xf32>
    %102 = arith.negf %101 : vector<16x32xf32>
    %103 = math.exp %102 : vector<16x32xf32>
    %cst_27 = arith.constant 1.000000e+00 : f32
    %104 = vector.broadcast %cst_27 : f32 to vector<16x32xf32>
    %105 = arith.addf %104, %103 : vector<16x32xf32>
    %106 = arith.divf %104, %105 : vector<16x32xf32>
    %107 = vector.extract_strided_slice %100 {offsets = [0, 32], sizes = [16, 32], strides = [1, 1]} : vector<16x128xf32> to vector<16x32xf32>
    %108 = arith.negf %107 : vector<16x32xf32>
    %109 = math.exp %108 : vector<16x32xf32>
    %cst_28 = arith.constant 1.000000e+00 : f32
    %110 = vector.broadcast %cst_28 : f32 to vector<16x32xf32>
    %111 = arith.addf %110, %109 : vector<16x32xf32>
    %112 = arith.divf %110, %111 : vector<16x32xf32>
    %113 = vector.extract_strided_slice %100 {offsets = [0, 64], sizes = [16, 32], strides = [1, 1]} : vector<16x128xf32> to vector<16x32xf32>
    %114 = math.tanh %113 : vector<16x32xf32>
    %115 = vector.extract_strided_slice %100 {offsets = [0, 96], sizes = [16, 32], strides = [1, 1]} : vector<16x128xf32> to vector<16x32xf32>
    %116 = arith.negf %115 : vector<16x32xf32>
    %117 = math.exp %116 : vector<16x32xf32>
    %cst_29 = arith.constant 1.000000e+00 : f32
    %118 = vector.broadcast %cst_29 : f32 to vector<16x32xf32>
    %119 = arith.addf %118, %117 : vector<16x32xf32>
    %120 = arith.divf %118, %119 : vector<16x32xf32>
    %121 = arith.mulf %112, %93 : vector<16x32xf32>
    %122 = arith.mulf %106, %114 : vector<16x32xf32>
    %123 = arith.addf %121, %122 : vector<16x32xf32>
    %124 = math.tanh %123 : vector<16x32xf32>
    %125 = arith.mulf %120, %124 : vector<16x32xf32>
    %c4_i32 = arith.constant 4 : i32
    %cst_30 = arith.constant dense<0.000000e+00> : vector<16x128xf32>
    %126 = tpu.matmul %125, %3, %cst_30 {dimension_numbers = #tpu.dot_dimension_numbers<[1], [0], [0], [1], [0, 0, 1, 1], [], []>} : vector<16x32xf32>, vector<32x128xf32>, vector<16x128xf32> -> vector<16x128xf32>
    %127 = arith.index_cast %c4_i32 : i32 to index
    %c0_31 = arith.constant 0 : index
    %c0_32 = arith.constant 0 : index
    %128 = vector.load %arg2[%127, %c0_31, %c0_32] : memref<8x16x128xf32, #tpu.memory_space<vmem>>, vector<1x16x128xf32>
    %129 = vector.shape_cast %128 : vector<1x16x128xf32> to vector<16x128xf32>
    %130 = arith.addf %129, %126 : vector<16x128xf32>
    %131 = vector.extract_strided_slice %130 {offsets = [0, 0], sizes = [16, 32], strides = [1, 1]} : vector<16x128xf32> to vector<16x32xf32>
    %132 = arith.negf %131 : vector<16x32xf32>
    %133 = math.exp %132 : vector<16x32xf32>
    %cst_33 = arith.constant 1.000000e+00 : f32
    %134 = vector.broadcast %cst_33 : f32 to vector<16x32xf32>
    %135 = arith.addf %134, %133 : vector<16x32xf32>
    %136 = arith.divf %134, %135 : vector<16x32xf32>
    %137 = vector.extract_strided_slice %130 {offsets = [0, 32], sizes = [16, 32], strides = [1, 1]} : vector<16x128xf32> to vector<16x32xf32>
    %138 = arith.negf %137 : vector<16x32xf32>
    %139 = math.exp %138 : vector<16x32xf32>
    %cst_34 = arith.constant 1.000000e+00 : f32
    %140 = vector.broadcast %cst_34 : f32 to vector<16x32xf32>
    %141 = arith.addf %140, %139 : vector<16x32xf32>
    %142 = arith.divf %140, %141 : vector<16x32xf32>
    %143 = vector.extract_strided_slice %130 {offsets = [0, 64], sizes = [16, 32], strides = [1, 1]} : vector<16x128xf32> to vector<16x32xf32>
    %144 = math.tanh %143 : vector<16x32xf32>
    %145 = vector.extract_strided_slice %130 {offsets = [0, 96], sizes = [16, 32], strides = [1, 1]} : vector<16x128xf32> to vector<16x32xf32>
    %146 = arith.negf %145 : vector<16x32xf32>
    %147 = math.exp %146 : vector<16x32xf32>
    %cst_35 = arith.constant 1.000000e+00 : f32
    %148 = vector.broadcast %cst_35 : f32 to vector<16x32xf32>
    %149 = arith.addf %148, %147 : vector<16x32xf32>
    %150 = arith.divf %148, %149 : vector<16x32xf32>
    %151 = arith.mulf %142, %123 : vector<16x32xf32>
    %152 = arith.mulf %136, %144 : vector<16x32xf32>
    %153 = arith.addf %151, %152 : vector<16x32xf32>
    %154 = math.tanh %153 : vector<16x32xf32>
    %155 = arith.mulf %150, %154 : vector<16x32xf32>
    %c5_i32 = arith.constant 5 : i32
    %cst_36 = arith.constant dense<0.000000e+00> : vector<16x128xf32>
    %156 = tpu.matmul %155, %3, %cst_36 {dimension_numbers = #tpu.dot_dimension_numbers<[1], [0], [0], [1], [0, 0, 1, 1], [], []>} : vector<16x32xf32>, vector<32x128xf32>, vector<16x128xf32> -> vector<16x128xf32>
    %157 = arith.index_cast %c5_i32 : i32 to index
    %c0_37 = arith.constant 0 : index
    %c0_38 = arith.constant 0 : index
    %158 = vector.load %arg2[%157, %c0_37, %c0_38] : memref<8x16x128xf32, #tpu.memory_space<vmem>>, vector<1x16x128xf32>
    %159 = vector.shape_cast %158 : vector<1x16x128xf32> to vector<16x128xf32>
    %160 = arith.addf %159, %156 : vector<16x128xf32>
    %161 = vector.extract_strided_slice %160 {offsets = [0, 0], sizes = [16, 32], strides = [1, 1]} : vector<16x128xf32> to vector<16x32xf32>
    %162 = arith.negf %161 : vector<16x32xf32>
    %163 = math.exp %162 : vector<16x32xf32>
    %cst_39 = arith.constant 1.000000e+00 : f32
    %164 = vector.broadcast %cst_39 : f32 to vector<16x32xf32>
    %165 = arith.addf %164, %163 : vector<16x32xf32>
    %166 = arith.divf %164, %165 : vector<16x32xf32>
    %167 = vector.extract_strided_slice %160 {offsets = [0, 32], sizes = [16, 32], strides = [1, 1]} : vector<16x128xf32> to vector<16x32xf32>
    %168 = arith.negf %167 : vector<16x32xf32>
    %169 = math.exp %168 : vector<16x32xf32>
    %cst_40 = arith.constant 1.000000e+00 : f32
    %170 = vector.broadcast %cst_40 : f32 to vector<16x32xf32>
    %171 = arith.addf %170, %169 : vector<16x32xf32>
    %172 = arith.divf %170, %171 : vector<16x32xf32>
    %173 = vector.extract_strided_slice %160 {offsets = [0, 64], sizes = [16, 32], strides = [1, 1]} : vector<16x128xf32> to vector<16x32xf32>
    %174 = math.tanh %173 : vector<16x32xf32>
    %175 = vector.extract_strided_slice %160 {offsets = [0, 96], sizes = [16, 32], strides = [1, 1]} : vector<16x128xf32> to vector<16x32xf32>
    %176 = arith.negf %175 : vector<16x32xf32>
    %177 = math.exp %176 : vector<16x32xf32>
    %cst_41 = arith.constant 1.000000e+00 : f32
    %178 = vector.broadcast %cst_41 : f32 to vector<16x32xf32>
    %179 = arith.addf %178, %177 : vector<16x32xf32>
    %180 = arith.divf %178, %179 : vector<16x32xf32>
    %181 = arith.mulf %172, %153 : vector<16x32xf32>
    %182 = arith.mulf %166, %174 : vector<16x32xf32>
    %183 = arith.addf %181, %182 : vector<16x32xf32>
    %184 = math.tanh %183 : vector<16x32xf32>
    %185 = arith.mulf %180, %184 : vector<16x32xf32>
    %c6_i32 = arith.constant 6 : i32
    %cst_42 = arith.constant dense<0.000000e+00> : vector<16x128xf32>
    %186 = tpu.matmul %185, %3, %cst_42 {dimension_numbers = #tpu.dot_dimension_numbers<[1], [0], [0], [1], [0, 0, 1, 1], [], []>} : vector<16x32xf32>, vector<32x128xf32>, vector<16x128xf32> -> vector<16x128xf32>
    %187 = arith.index_cast %c6_i32 : i32 to index
    %c0_43 = arith.constant 0 : index
    %c0_44 = arith.constant 0 : index
    %188 = vector.load %arg2[%187, %c0_43, %c0_44] : memref<8x16x128xf32, #tpu.memory_space<vmem>>, vector<1x16x128xf32>
    %189 = vector.shape_cast %188 : vector<1x16x128xf32> to vector<16x128xf32>
    %190 = arith.addf %189, %186 : vector<16x128xf32>
    %191 = vector.extract_strided_slice %190 {offsets = [0, 0], sizes = [16, 32], strides = [1, 1]} : vector<16x128xf32> to vector<16x32xf32>
    %192 = arith.negf %191 : vector<16x32xf32>
    %193 = math.exp %192 : vector<16x32xf32>
    %cst_45 = arith.constant 1.000000e+00 : f32
    %194 = vector.broadcast %cst_45 : f32 to vector<16x32xf32>
    %195 = arith.addf %194, %193 : vector<16x32xf32>
    %196 = arith.divf %194, %195 : vector<16x32xf32>
    %197 = vector.extract_strided_slice %190 {offsets = [0, 32], sizes = [16, 32], strides = [1, 1]} : vector<16x128xf32> to vector<16x32xf32>
    %198 = arith.negf %197 : vector<16x32xf32>
    %199 = math.exp %198 : vector<16x32xf32>
    %cst_46 = arith.constant 1.000000e+00 : f32
    %200 = vector.broadcast %cst_46 : f32 to vector<16x32xf32>
    %201 = arith.addf %200, %199 : vector<16x32xf32>
    %202 = arith.divf %200, %201 : vector<16x32xf32>
    %203 = vector.extract_strided_slice %190 {offsets = [0, 64], sizes = [16, 32], strides = [1, 1]} : vector<16x128xf32> to vector<16x32xf32>
    %204 = math.tanh %203 : vector<16x32xf32>
    %205 = vector.extract_strided_slice %190 {offsets = [0, 96], sizes = [16, 32], strides = [1, 1]} : vector<16x128xf32> to vector<16x32xf32>
    %206 = arith.negf %205 : vector<16x32xf32>
    %207 = math.exp %206 : vector<16x32xf32>
    %cst_47 = arith.constant 1.000000e+00 : f32
    %208 = vector.broadcast %cst_47 : f32 to vector<16x32xf32>
    %209 = arith.addf %208, %207 : vector<16x32xf32>
    %210 = arith.divf %208, %209 : vector<16x32xf32>
    %211 = arith.mulf %202, %183 : vector<16x32xf32>
    %212 = arith.mulf %196, %204 : vector<16x32xf32>
    %213 = arith.addf %211, %212 : vector<16x32xf32>
    %214 = math.tanh %213 : vector<16x32xf32>
    %215 = arith.mulf %210, %214 : vector<16x32xf32>
    %c7_i32 = arith.constant 7 : i32
    %cst_48 = arith.constant dense<0.000000e+00> : vector<16x128xf32>
    %216 = tpu.matmul %215, %3, %cst_48 {dimension_numbers = #tpu.dot_dimension_numbers<[1], [0], [0], [1], [0, 0, 1, 1], [], []>} : vector<16x32xf32>, vector<32x128xf32>, vector<16x128xf32> -> vector<16x128xf32>
    %217 = arith.index_cast %c7_i32 : i32 to index
    %c0_49 = arith.constant 0 : index
    %c0_50 = arith.constant 0 : index
    %218 = vector.load %arg2[%217, %c0_49, %c0_50] : memref<8x16x128xf32, #tpu.memory_space<vmem>>, vector<1x16x128xf32>
    %219 = vector.shape_cast %218 : vector<1x16x128xf32> to vector<16x128xf32>
    %220 = arith.addf %219, %216 : vector<16x128xf32>
    %221 = vector.extract_strided_slice %220 {offsets = [0, 0], sizes = [16, 32], strides = [1, 1]} : vector<16x128xf32> to vector<16x32xf32>
    %222 = arith.negf %221 : vector<16x32xf32>
    %223 = math.exp %222 : vector<16x32xf32>
    %cst_51 = arith.constant 1.000000e+00 : f32
    %224 = vector.broadcast %cst_51 : f32 to vector<16x32xf32>
    %225 = arith.addf %224, %223 : vector<16x32xf32>
    %226 = arith.divf %224, %225 : vector<16x32xf32>
    %227 = vector.extract_strided_slice %220 {offsets = [0, 32], sizes = [16, 32], strides = [1, 1]} : vector<16x128xf32> to vector<16x32xf32>
    %228 = arith.negf %227 : vector<16x32xf32>
    %229 = math.exp %228 : vector<16x32xf32>
    %cst_52 = arith.constant 1.000000e+00 : f32
    %230 = vector.broadcast %cst_52 : f32 to vector<16x32xf32>
    %231 = arith.addf %230, %229 : vector<16x32xf32>
    %232 = arith.divf %230, %231 : vector<16x32xf32>
    %233 = vector.extract_strided_slice %220 {offsets = [0, 64], sizes = [16, 32], strides = [1, 1]} : vector<16x128xf32> to vector<16x32xf32>
    %234 = math.tanh %233 : vector<16x32xf32>
    %235 = vector.extract_strided_slice %220 {offsets = [0, 96], sizes = [16, 32], strides = [1, 1]} : vector<16x128xf32> to vector<16x32xf32>
    %236 = arith.negf %235 : vector<16x32xf32>
    %237 = math.exp %236 : vector<16x32xf32>
    %cst_53 = arith.constant 1.000000e+00 : f32
    %238 = vector.broadcast %cst_53 : f32 to vector<16x32xf32>
    %239 = arith.addf %238, %237 : vector<16x32xf32>
    %240 = arith.divf %238, %239 : vector<16x32xf32>
    %241 = arith.mulf %232, %213 : vector<16x32xf32>
    %242 = arith.mulf %226, %234 : vector<16x32xf32>
    %243 = arith.addf %241, %242 : vector<16x32xf32>
    %244 = math.tanh %243 : vector<16x32xf32>
    %245 = arith.mulf %240, %244 : vector<16x32xf32>
    %c8_i32 = arith.constant 8 : i32
    %c0_54 = arith.constant 0 : index
    %c0_55 = arith.constant 0 : index
    %246 = vector.load %arg5[%c0_54, %c0_55] : memref<16x32xf32, #tpu.memory_space<vmem>>, vector<16x32xf32>
    tpu.vector_store %arg5[%c0_54, %c0_55], %245 {strides = array<i32>} : memref<16x32xf32, #tpu.memory_space<vmem>>, vector<16x32xf32>,
    %c0_56 = arith.constant 0 : index
    %c0_57 = arith.constant 0 : index
    %247 = vector.load %arg6[%c0_56, %c0_57] : memref<16x32xf32, #tpu.memory_space<vmem>>, vector<16x32xf32>
    tpu.vector_store %arg6[%c0_56, %c0_57], %243 {strides = array<i32>} : memref<16x32xf32, #tpu.memory_space<vmem>>, vector<16x32xf32>,
    %c0_i32_58 = arith.constant 0 : i32
    %248 = arith.cmpi eq, %arg1, %c0_i32_58 : i32
    %249 = arith.extui %248 : i1 to i32
    %c0_i32_59 = arith.constant 0 : i32
    %250 = arith.cmpi ne, %249, %c0_i32_59 : i32
    scf.if %250 {
      %c0_60 = arith.constant 0 : index
      %c0_61 = arith.constant 0 : index
      %251 = vector.load %arg4[%c0_60, %c0_61] : memref<16x32xf32, #tpu.memory_space<vmem>>, vector<16x32xf32>
      tpu.vector_store %arg4[%c0_60, %c0_61], %245 {strides = array<i32>} : memref<16x32xf32, #tpu.memory_space<vmem>>, vector<16x32xf32>,
    } else {
    }
    return
  }
  func.func @transform_0(%arg0: i32, %arg1: i32) -> (i32, i32, i32) {
    %c0_i32 = arith.constant 0 : i32
    %c0_i32_0 = arith.constant 0 : i32
    return %arg1, %arg0, %c0_i32 : i32, i32, i32
  }
  func.func @transform_1(%arg0: i32, %arg1: i32) -> (i32, i32) {
    %c0_i32 = arith.constant 0 : i32
    %c0_i32_0 = arith.constant 0 : i32
    %c0_i32_1 = arith.constant 0 : i32
    return %c0_i32, %c0_i32_0 : i32, i32
  }
  func.func @transform_2(%arg0: i32, %arg1: i32) -> (i32, i32) {
    %c0_i32 = arith.constant 0 : i32
    %c0_i32_0 = arith.constant 0 : i32
    return %arg0, %c0_i32 : i32, i32
  }
}

</mosaic_0001>

<bundles_post_ra>
// kernel: encoder_rnn_forward.1
= control target key start
LH: loop header
LB: loop body
LE: loop exit
PB: predicated region body
PF: predicated region fallthrough
CT: control target
= control target key end

     0   :  { %vm15_vm0 = vcmask 261120   ;;  %v1543_v3 = vmov 0.0   ;;  %s1545_s21 = smov 64   ;;  %s1756_s1 = inlined_call_operand.vmem [shape: f32[32,128], index: 1, kind: input, shape index: {}]   ;;  %s1757_s0 = inlined_call_operand.vmem [shape: f32[8,16,128], index: 0, kind: input, shape index: {}]   ;;  %s1758_s2 = inlined_call_operand.vmem [shape: f32[16,32], index: 2, kind: output, shape index: {}]  }
   0x1   :  { %v20_v0 = vld [vmem:[%s1756_s1] sm:$0xff]  ;;  %v21_v1 = vld [vmem:[%s1756_s1 + $0x8] sm:$0xff]  ;;  %v22_v2 = vld [vmem:[%s1756_s1 + $0x10] sm:$0xff]  ;;  %16 = vst.msk [vmem:[#allocation2] sm:$0xff] %vm15_vm0, %v1543_v3 }
   0x2   :  { %17 = vst.msk [vmem:[#allocation2 + $0x8] sm:$0xff] %vm15_vm0, %v1543_v3  ;;  %18 = vst.msk [vmem:[#allocation3] sm:$0xff] %vm15_vm0, %v1543_v3  ;;  %v1575_v4 = vpack.c.bf16 %v21_v1, %v20_v0  ;;  %v23_v5 = vld [vmem:[%s1756_s1 + $0x18] sm:$0xff]  ;;  %s1544_s1 = smov 32   ;;  %v110_v11 = vld [vmem:[%s1757_s0] sm:$0xff] }
   0x3   :  { %19 = vst.msk [vmem:[#allocation3 + $0x8] sm:$0xff] %vm15_vm0, %v1543_v3  ;;  %v1580_v6 = vpack.c.bf16 %v23_v5, %v22_v2  ;;  %v111_v13 = vld [vmem:[%s1757_s0 + $0x8] sm:$0xff]  ;;  %v1172_v47 = vld [vmem:[%s1757_s0 + $0x18] sm:$0xff]  ;;  %v1171_v48 = vld [vmem:[%s1757_s0 + $0x10] sm:$0xff] }
   0x4   :  { %1348 = vmatprep.subr.bf16.mxu0 %v1575_v4  ;;  %1356 = vmatprep.subr.bf16.mxu1 %v1575_v4 }
   0x5   :  { %1350 = vmatpush3.bf16.msra.mxu0 %v1575_v4  ;;  %1358 = vmatpush3.bf16.msra.mxu1 %v1575_v4 }
   0x6   :  { %1352 = vmatprep.subr.bf16.mxu0 %v1580_v6  ;;  %1360 = vmatprep.subr.bf16.mxu1 %v1580_v6 }
   0x8   :  { %v24_v7 = vld [vmem:[#allocation2] sm:$0xff] }
   0x9   :  { %v26_v8 = vld [vmem:[#allocation3] sm:$0xff]  ;;  %1354 = vmatpush3.bf16.msra.mxu0 %v1580_v6  ;;  %1267 = vmatprep.mubr.msk.f32.mxu0 %vm15_vm0, %v24_v7  ;;  %v25_v9 = vld [vmem:[#allocation2 + $0x8] sm:$0xff] }
   0xa   :  { %130 = vrot.lane.b32.xlu1 %v26_v8, %s1544_s1  ;;  %1362 = vmatpush3.bf16.msra.mxu1 %v1580_v6  ;;  %v27_v10 = vld [vmem:[#allocation3 + $0x8] sm:$0xff] }
   0xb   :  { %1364 = vmatprep.subr.bf16.mxu0 %v1575_v4  ;;  %1372 = vmatprep.subr.bf16.mxu1 %v1575_v4 }
   0xc   :  { %1268 = vmatmul.mubr.msk.f32.vlgmr.msra.gmra.mrb[0].mxu0 %vm15_vm0, %v25_v9 }
   0xd   :  { %1366 = vmatpush3.bf16.msra.mxu0 %v1575_v4 }
   0xe   :  { %132 = vrot.lane.b32.xlu1 %v27_v10, %s1544_s1  ;;  %1368 = vmatprep.subr.bf16.mxu0 %v1580_v6 }
  0x11   :  { %1370 = vmatpush3.bf16.msra.mxu0 %v1580_v6 }
  0x12   :  { %1380 = vmatprep.subr.bf16.mxu0 %v1575_v4 }
  0x7c   :  { %v131_v31 = vpop.permute.xlu1 %130 }
  0x80   :  { %v133_v33 = vpop.permute.xlu1 %132 }
  0xdf   :  { %v1269_v12 = vpop.f32.mrb[0].mxu0 }
  0xe0   :  { %v101_v14 = vpop.f32.mrb[1].mxu0  ;;  %v113_v16 = vadd.f32 %v1269_v12, %v111_v13 }
  0xe1   :  { %v112_v15 = vadd.f32 %v110_v11, %v101_v14 }
  0xe2   :  { %v1168_v20 = vmul.f32 -1.442695, %v113_v16 }
  0xe3   :  { %1415 = vtanh.f32 %v112_v15  ;;  %v1167_v19 = vmul.f32 -1.442695, %v112_v15 }
  0xe4   :  { %1417 = vtanh.f32 %v113_v16 }
  0xe5   :  { %1419 = vpow2.f32 %v1167_v19  ;;  %v1178_v19 = vld [vmem:[%s1757_s0 + $0x28] sm:$0xff] }
  0xe6   :  { %1421 = vpow2.f32 %v1168_v20  ;;  %v1177_v20 = vld [vmem:[%s1757_s0 + $0x20] sm:$0xff] }
  0xed   :  { %v1416_v17 = vpop.eup %1415 }
  0xee   :  { %140 = vrot.lane.b32.xlu0 %v1416_v17, %s1545_s21  ;;  %v1418_v18 = vpop.eup %1417 }
  0xef   :  { %v1420_v21 = vpop.eup %1419 }
  0xf0   :  { %v120_v22 = vadd.f32 1.0, %v1420_v21  ;;  %v1422_v23 = vpop.eup %1421 }
  0xf1   :  { %v121_v24 = vadd.f32 1.0, %v1422_v23 }
  0xf2   :  { %142 = vrot.lane.b32.xlu0 %v1418_v18, %s1545_s21  ;;  %1423 = vrcp.f32 %v120_v22 }
  0xf3   :  { %1425 = vrcp.f32 %v121_v24 }
  0xfc   :  { %v1424_v25 = vpop.eup %1423 }
  0xfd   :  { %v1426_v28 = vpop.eup %1425  ;;  %v136_v32 = vmul.f32 %v1424_v25, %v131_v31 }
  0xfe   :  { %v137_v36 = vmul.f32 %v1426_v28, %v133_v33 }
 0x160   :  { %v141_v26 = vpop.permute.xlu0 %140 }
 0x161   :  { %v146_v27 = vmul.f32 %v1424_v25, %v141_v26 }
 0x163   :  { %150 = vrot.lane.b32.xlu0 %v146_v27, %s1544_s1 }
 0x164   :  { %v143_v29 = vpop.permute.xlu0 %142 }
 0x165   :  { %v147_v30 = vmul.f32 %v1426_v28, %v143_v29 }
 0x167   :  { %152 = vrot.lane.b32.xlu1 %v147_v30, %s1544_s1 }
 0x1d5   :  { %v151_v34 = vpop.permute.xlu0 %150 }
 0x1d6   :  { %v156_v35 = vadd.f32 %v151_v34, %v136_v32 }
 0x1d8   :  { %1427 = vtanh.f32 %v156_v35 }
 0x1d9   :  { %v153_v37 = vpop.permute.xlu1 %152 }
 0x1da   :  { %v157_v38 = vadd.f32 %v153_v37, %v137_v36 }
 0x1dc   :  { %1429 = vtanh.f32 %v157_v38 }
 0x1e2   :  { %v1428_v39 = vpop.eup %1427 }
 0x1e3   :  { %162 = vrot.lane.b32.xlu0 %v1428_v39, %s1545_s21 }
 0x1e6   :  { %v1430_v40 = vpop.eup %1429 }
 0x1e7   :  { %164 = vrot.lane.b32.xlu1 %v1430_v40, %s1545_s21 }
 0x255   :  { %v163_v41 = vpop.permute.xlu0 %162 }
 0x256   :  { %v168_v42 = vmul.f32 %v1424_v25, %v163_v41 }
 0x258   :  { %172 = vrot.lane.b32.xlu0 %v168_v42, %s1544_s1 }
 0x259   :  { %v165_v43 = vpop.permute.xlu1 %164 }
 0x25a   :  { %v169_v44 = vmul.f32 %v1426_v28, %v165_v43 }
 0x25c   :  { %174 = vrot.lane.b32.xlu1 %v169_v44, %s1544_s1 }
 0x2ca   :  { %v173_v45 = vpop.permute.xlu0 %172 }
 0x2cb   :  { %1278 = vmatprep.mubr.msk.f32.mxu1 %vm15_vm0, %v173_v45 }
 0x2ce   :  { %v175_v46 = vpop.permute.xlu1 %174 }
 0x2cf   :  { %1279 = vmatmul.mubr.msk.f32.vlgmr.msra.gmra.mrb[0].mxu1 %vm15_vm0, %v175_v46 }
 0x2d0   :  { %1374 = vmatpush3.bf16.msra.mxu1 %v1575_v4 }
 0x2d1   :  { %1376 = vmatprep.subr.bf16.mxu1 %v1580_v6 }
 0x2d4   :  { %1378 = vmatpush3.bf16.msra.mxu1 %v1580_v6 }
 0x2d5   :  { %1388 = vmatprep.subr.bf16.mxu1 %v1575_v4 }
 0x3a2   :  { %v1280_v49 = vpop.f32.mrb[0].mxu1 }
 0x3a3   :  { %v259_v50 = vadd.f32 %v1280_v49, %v1172_v47  ;;  %v246_v51 = vpop.f32.mrb[1].mxu1 }
 0x3a4   :  { %v258_v52 = vadd.f32 %v1171_v48, %v246_v51 }
 0x3a5   :  { %1431 = vtanh.f32 %v259_v50  ;;  %v1174_v55 = vmul.f32 -1.442695, %v259_v50 }
 0x3a6   :  { %1433 = vtanh.f32 %v258_v52  ;;  %v1173_v56 = vmul.f32 -1.442695, %v258_v52 }
 0x3a7   :  { %1435 = vpow2.f32 %v1174_v55 }
 0x3a8   :  { %1437 = vpow2.f32 %v1173_v56 }
 0x3af   :  { %v1432_v53 = vpop.eup %1431 }
 0x3b0   :  { %v1434_v54 = vpop.eup %1433  ;;  %280 = vrot.lane.b32.xlu1 %v1432_v53, %s1545_s21  ;;  %v1184_v53 = vld [vmem:[%s1757_s0 + $0x38] sm:$0xff] }
 0x3b1   :  { %278 = vrot.lane.b32.xlu0 %v1434_v54, %s1545_s21  ;;  %v1436_v57 = vpop.eup %1435  ;;  %v1183_v54 = vld [vmem:[%s1757_s0 + $0x30] sm:$0xff] }
 0x3b2   :  { %v1438_v58 = vpop.eup %1437  ;;  %v267_v59 = vadd.f32 1.0, %v1436_v57 }
 0x3b3   :  { %v266_v60 = vadd.f32 1.0, %v1438_v58 }
 0x3b4   :  { %1439 = vrcp.f32 %v267_v59 }
 0x3b5   :  { %1441 = vrcp.f32 %v266_v60 }
 0x3be   :  { %v1440_v61 = vpop.eup %1439 }
 0x3bf   :  { %v1442_v63 = vpop.eup %1441  ;;  %v275_v3 = vmul.f32 %v1440_v61, %v157_v38 }
 0x3c0   :  { %v274_v7 = vmul.f32 %v1442_v63, %v156_v35 }
 0x422   :  { %v281_v62 = vpop.permute.xlu1 %280 }
 0x423   :  { %v285_v0 = vmul.f32 %v1440_v61, %v281_v62  ;;  %v279_v1 = vpop.permute.xlu0 %278 }
 0x424   :  { %v284_v2 = vmul.f32 %v1442_v63, %v279_v1 }
 0x425   :  { %290 = vrot.lane.b32.xlu1 %v285_v0, %s1544_s1 }
 0x426   :  { %288 = vrot.lane.b32.xlu0 %v284_v2, %s1544_s1 }
 0x497   :  { %v291_v5 = vpop.permute.xlu1 %290 }
 0x498   :  { %v295_v8 = vadd.f32 %v291_v5, %v275_v3  ;;  %v289_v9 = vpop.permute.xlu0 %288 }
 0x499   :  { %v294_v10 = vadd.f32 %v289_v9, %v274_v7 }
 0x49a   :  { %1443 = vtanh.f32 %v295_v8 }
 0x49b   :  { %1445 = vtanh.f32 %v294_v10 }
 0x4a4   :  { %v1444_v11 = vpop.eup %1443 }
 0x4a5   :  { %v1446_v12 = vpop.eup %1445  ;;  %302 = vrot.lane.b32.xlu1 %v1444_v11, %s1545_s21 }
 0x4a6   :  { %300 = vrot.lane.b32.xlu0 %v1446_v12, %s1545_s21 }
 0x517   :  { %v303_v13 = vpop.permute.xlu1 %302 }
 0x518   :  { %v307_v14 = vmul.f32 %v1440_v61, %v303_v13  ;;  %v301_v15 = vpop.permute.xlu0 %300 }
 0x519   :  { %v306_v16 = vmul.f32 %v1442_v63, %v301_v15 }
 0x51a   :  { %312 = vrot.lane.b32.xlu1 %v307_v14, %s1544_s1 }
 0x51b   :  { %310 = vrot.lane.b32.xlu0 %v306_v16, %s1544_s1 }
 0x58c   :  { %v313_v18 = vpop.permute.xlu1 %312 }
 0x58d   :  { %v311_v17 = vpop.permute.xlu0 %310 }
 0x58e   :  { %1289 = vmatprep.mubr.msk.f32.mxu0 %vm15_vm0, %v311_v17 }
 0x58f   :  { %1290 = vmatmul.mubr.msk.f32.vlgmr.msra.gmra.mrb[2].mxu0 %vm15_vm0, %v313_v18 }
 0x590   :  { %1382 = vmatpush3.bf16.msra.mxu0 %v1575_v4 }
 0x591   :  { %1384 = vmatprep.subr.bf16.mxu0 %v1580_v6 }
 0x594   :  { %1386 = vmatpush3.bf16.msra.mxu0 %v1580_v6 }
 0x595   :  { %1396 = vmatprep.subr.bf16.mxu0 %v1575_v4 }
 0x662   :  { %v1291_v21 = vpop.f32.mrb[2].mxu0 }
 0x663   :  { %v397_v22 = vadd.f32 %v1291_v21, %v1178_v19  ;;  %v384_v23 = vpop.f32.mrb[3].mxu0 }
 0x664   :  { %v396_v24 = vadd.f32 %v1177_v20, %v384_v23 }
 0x665   :  { %1447 = vtanh.f32 %v397_v22  ;;  %v1180_v27 = vmul.f32 -1.442695, %v397_v22 }
 0x666   :  { %1449 = vtanh.f32 %v396_v24  ;;  %v1179_v28 = vmul.f32 -1.442695, %v396_v24 }
 0x667   :  { %1451 = vpow2.f32 %v1180_v27 }
 0x668   :  { %1453 = vpow2.f32 %v1179_v28 }
 0x66f   :  { %v1448_v25 = vpop.eup %1447 }
 0x670   :  { %v1450_v26 = vpop.eup %1449  ;;  %418 = vrot.lane.b32.xlu1 %v1448_v25, %s1545_s21  ;;  %v1190_v25 = vld [vmem:[%s1757_s0 + $0x48] sm:$0xff] }
 0x671   :  { %416 = vrot.lane.b32.xlu0 %v1450_v26, %s1545_s21  ;;  %v1452_v29 = vpop.eup %1451  ;;  %v1189_v26 = vld [vmem:[%s1757_s0 + $0x40] sm:$0xff] }
 0x672   :  { %v1454_v30 = vpop.eup %1453  ;;  %v405_v31 = vadd.f32 1.0, %v1452_v29 }
 0x673   :  { %v404_v32 = vadd.f32 1.0, %v1454_v30 }
 0x674   :  { %1455 = vrcp.f32 %v405_v31 }
 0x675   :  { %1457 = vrcp.f32 %v404_v32 }
 0x67e   :  { %v1456_v33 = vpop.eup %1455 }
 0x67f   :  { %v1458_v35 = vpop.eup %1457  ;;  %v413_v39 = vmul.f32 %v1456_v33, %v295_v8 }
 0x680   :  { %v412_v41 = vmul.f32 %v1458_v35, %v294_v10 }
 0x6e2   :  { %v419_v34 = vpop.permute.xlu1 %418 }
 0x6e3   :  { %v423_v36 = vmul.f32 %v1456_v33, %v419_v34  ;;  %v417_v37 = vpop.permute.xlu0 %416 }
 0x6e4   :  { %v422_v38 = vmul.f32 %v1458_v35, %v417_v37 }
 0x6e5   :  { %428 = vrot.lane.b32.xlu1 %v423_v36, %s1544_s1 }
 0x6e6   :  { %426 = vrot.lane.b32.xlu0 %v422_v38, %s1544_s1 }
 0x757   :  { %v429_v40 = vpop.permute.xlu1 %428 }
 0x758   :  { %v433_v42 = vadd.f32 %v429_v40, %v413_v39  ;;  %v427_v43 = vpop.permute.xlu0 %426 }
 0x759   :  { %v432_v44 = vadd.f32 %v427_v43, %v412_v41 }
 0x75a   :  { %1459 = vtanh.f32 %v433_v42 }
 0x75b   :  { %1461 = vtanh.f32 %v432_v44 }
 0x764   :  { %v1460_v45 = vpop.eup %1459 }
 0x765   :  { %v1462_v46 = vpop.eup %1461  ;;  %440 = vrot.lane.b32.xlu1 %v1460_v45, %s1545_s21 }
 0x766   :  { %438 = vrot.lane.b32.xlu0 %v1462_v46, %s1545_s21 }
 0x7d7   :  { %v441_v47 = vpop.permute.xlu1 %440 }
 0x7d8   :  { %v445_v48 = vmul.f32 %v1456_v33, %v441_v47  ;;  %v439_v49 = vpop.permute.xlu0 %438 }
 0x7d9   :  { %v444_v50 = vmul.f32 %v1458_v35, %v439_v49 }
 0x7da   :  { %450 = vrot.lane.b32.xlu1 %v445_v48, %s1544_s1 }
 0x7db   :  { %448 = vrot.lane.b32.xlu0 %v444_v50, %s1544_s1 }
 0x84c   :  { %v451_v52 = vpop.permute.xlu1 %450 }
 0x84d   :  { %v449_v51 = vpop.permute.xlu0 %448 }
 0x84e   :  { %1300 = vmatprep.mubr.msk.f32.mxu1 %vm15_vm0, %v449_v51 }
 0x84f   :  { %1301 = vmatmul.mubr.msk.f32.vlgmr.msra.gmra.mrb[2].mxu1 %vm15_vm0, %v451_v52 }
 0x850   :  { %1390 = vmatpush3.bf16.msra.mxu1 %v1575_v4 }
 0x851   :  { %1392 = vmatprep.subr.bf16.mxu1 %v1580_v6 }
 0x854   :  { %1394 = vmatpush3.bf16.msra.mxu1 %v1580_v6 }
 0x855   :  { %1404 = vmatprep.subr.bf16.mxu1 %v1575_v4 }
 0x922   :  { %v1302_v55 = vpop.f32.mrb[2].mxu1 }
 0x923   :  { %v535_v56 = vadd.f32 %v1302_v55, %v1184_v53  ;;  %v522_v57 = vpop.f32.mrb[3].mxu1 }
 0x924   :  { %v534_v58 = vadd.f32 %v1183_v54, %v522_v57 }
 0x925   :  { %1463 = vtanh.f32 %v535_v56  ;;  %v1186_v61 = vmul.f32 -1.442695, %v535_v56 }
 0x926   :  { %1465 = vtanh.f32 %v534_v58  ;;  %v1185_v62 = vmul.f32 -1.442695, %v534_v58 }
 0x927   :  { %1467 = vpow2.f32 %v1186_v61 }
 0x928   :  { %1469 = vpow2.f32 %v1185_v62 }
 0x92f   :  { %v1464_v59 = vpop.eup %1463 }
 0x930   :  { %v1466_v60 = vpop.eup %1465  ;;  %556 = vrot.lane.b32.xlu1 %v1464_v59, %s1545_s21  ;;  %v1196_v59 = vld [vmem:[%s1757_s0 + $0x58] sm:$0xff] }
 0x931   :  { %554 = vrot.lane.b32.xlu0 %v1466_v60, %s1545_s21  ;;  %v1468_v63 = vpop.eup %1467  ;;  %v1195_v60 = vld [vmem:[%s1757_s0 + $0x50] sm:$0xff] }
 0x932   :  { %v1470_v0 = vpop.eup %1469  ;;  %v543_v1 = vadd.f32 1.0, %v1468_v63 }
 0x933   :  { %v542_v2 = vadd.f32 1.0, %v1470_v0 }
 0x934   :  { %1471 = vrcp.f32 %v543_v1 }
 0x935   :  { %1473 = vrcp.f32 %v542_v2 }
 0x93e   :  { %v1472_v3 = vpop.eup %1471 }
 0x93f   :  { %v1474_v7 = vpop.eup %1473  ;;  %v551_v11 = vmul.f32 %v1472_v3, %v433_v42 }
 0x940   :  { %v550_v13 = vmul.f32 %v1474_v7, %v432_v44 }
 0x9a2   :  { %v557_v5 = vpop.permute.xlu1 %556 }
 0x9a3   :  { %v561_v8 = vmul.f32 %v1472_v3, %v557_v5  ;;  %v555_v9 = vpop.permute.xlu0 %554 }
 0x9a4   :  { %v560_v10 = vmul.f32 %v1474_v7, %v555_v9 }
 0x9a5   :  { %566 = vrot.lane.b32.xlu1 %v561_v8, %s1544_s1 }
 0x9a6   :  { %564 = vrot.lane.b32.xlu0 %v560_v10, %s1544_s1 }
 0xa17   :  { %v567_v12 = vpop.permute.xlu1 %566 }
 0xa18   :  { %v571_v14 = vadd.f32 %v567_v12, %v551_v11  ;;  %v565_v15 = vpop.permute.xlu0 %564 }
 0xa19   :  { %v570_v16 = vadd.f32 %v565_v15, %v550_v13 }
 0xa1a   :  { %1475 = vtanh.f32 %v571_v14 }
 0xa1b   :  { %1477 = vtanh.f32 %v570_v16 }
 0xa24   :  { %v1476_v17 = vpop.eup %1475 }
 0xa25   :  { %v1478_v18 = vpop.eup %1477  ;;  %578 = vrot.lane.b32.xlu1 %v1476_v17, %s1545_s21 }
 0xa26   :  { %576 = vrot.lane.b32.xlu0 %v1478_v18, %s1545_s21 }
 0xa97   :  { %v579_v19 = vpop.permute.xlu1 %578 }
 0xa98   :  { %v583_v20 = vmul.f32 %v1472_v3, %v579_v19  ;;  %v577_v21 = vpop.permute.xlu0 %576 }
 0xa99   :  { %v582_v22 = vmul.f32 %v1474_v7, %v577_v21 }
 0xa9a   :  { %588 = vrot.lane.b32.xlu1 %v583_v20, %s1544_s1 }
 0xa9b   :  { %586 = vrot.lane.b32.xlu0 %v582_v22, %s1544_s1 }
 0xb0c   :  { %v589_v24 = vpop.permute.xlu1 %588 }
 0xb0d   :  { %v587_v23 = vpop.permute.xlu0 %586 }
 0xb0e   :  { %1311 = vmatprep.mubr.msk.f32.mxu0 %vm15_vm0, %v587_v23 }
 0xb0f   :  { %1312 = vmatmul.mubr.msk.f32.vlgmr.msra.gmra.mrb[4].mxu0 %vm15_vm0, %v589_v24 }
 0xb10   :  { %1398 = vmatpush3.bf16.msra.mxu0 %v1575_v4 }
 0xb11   :  { %1400 = vmatprep.subr.bf16.mxu0 %v1580_v6 }
 0xb14   :  { %1402 = vmatpush3.bf16.msra.mxu0 %v1580_v6 }
 0xbe2   :  { %v1313_v27 = vpop.f32.mrb[4].mxu0 }
 0xbe3   :  { %v673_v28 = vadd.f32 %v1313_v27, %v1190_v25  ;;  %v660_v29 = vpop.f32.mrb[5].mxu0 }
 0xbe4   :  { %v672_v30 = vadd.f32 %v1189_v26, %v660_v29  ;;  %v1202_v29 = vld [vmem:[%s1757_s0 + $0x68] sm:$0xff] }
 0xbe5   :  { %1479 = vtanh.f32 %v673_v28  ;;  %v1192_v33 = vmul.f32 -1.442695, %v673_v28 }
 0xbe6   :  { %1481 = vtanh.f32 %v672_v30  ;;  %v1191_v34 = vmul.f32 -1.442695, %v672_v30  ;;  %v1201_v30 = vld [vmem:[%s1757_s0 + $0x60] sm:$0xff] }
 0xbe7   :  { %1483 = vpow2.f32 %v1192_v33 }
 0xbe8   :  { %1485 = vpow2.f32 %v1191_v34 }
 0xbef   :  { %v1480_v31 = vpop.eup %1479 }
 0xbf0   :  { %v1482_v32 = vpop.eup %1481  ;;  %694 = vrot.lane.b32.xlu1 %v1480_v31, %s1545_s21 }
 0xbf1   :  { %692 = vrot.lane.b32.xlu0 %v1482_v32, %s1545_s21  ;;  %v1484_v35 = vpop.eup %1483 }
 0xbf2   :  { %v1486_v36 = vpop.eup %1485  ;;  %v681_v37 = vadd.f32 1.0, %v1484_v35 }
 0xbf3   :  { %v680_v38 = vadd.f32 1.0, %v1486_v36 }
 0xbf4   :  { %1487 = vrcp.f32 %v681_v37 }
 0xbf5   :  { %1489 = vrcp.f32 %v680_v38 }
 0xbfe   :  { %v1488_v39 = vpop.eup %1487 }
 0xbff   :  { %v1490_v41 = vpop.eup %1489  ;;  %v689_v45 = vmul.f32 %v1488_v39, %v571_v14 }
 0xc00   :  { %v688_v47 = vmul.f32 %v1490_v41, %v570_v16 }
 0xc62   :  { %v695_v40 = vpop.permute.xlu1 %694 }
 0xc63   :  { %v699_v42 = vmul.f32 %v1488_v39, %v695_v40  ;;  %v693_v43 = vpop.permute.xlu0 %692 }
 0xc64   :  { %v698_v44 = vmul.f32 %v1490_v41, %v693_v43 }
 0xc65   :  { %704 = vrot.lane.b32.xlu1 %v699_v42, %s1544_s1 }
 0xc66   :  { %702 = vrot.lane.b32.xlu0 %v698_v44, %s1544_s1 }
 0xcd7   :  { %v705_v46 = vpop.permute.xlu1 %704 }
 0xcd8   :  { %v709_v48 = vadd.f32 %v705_v46, %v689_v45  ;;  %v703_v49 = vpop.permute.xlu0 %702 }
 0xcd9   :  { %v708_v50 = vadd.f32 %v703_v49, %v688_v47 }
 0xcda   :  { %1491 = vtanh.f32 %v709_v48 }
 0xcdb   :  { %1493 = vtanh.f32 %v708_v50 }
 0xce4   :  { %v1492_v51 = vpop.eup %1491 }
 0xce5   :  { %v1494_v52 = vpop.eup %1493  ;;  %716 = vrot.lane.b32.xlu1 %v1492_v51, %s1545_s21 }
 0xce6   :  { %714 = vrot.lane.b32.xlu0 %v1494_v52, %s1545_s21 }
 0xd57   :  { %v717_v53 = vpop.permute.xlu1 %716 }
 0xd58   :  { %v721_v54 = vmul.f32 %v1488_v39, %v717_v53  ;;  %v715_v55 = vpop.permute.xlu0 %714 }
 0xd59   :  { %v720_v56 = vmul.f32 %v1490_v41, %v715_v55 }
 0xd5a   :  { %726 = vrot.lane.b32.xlu1 %v721_v54, %s1544_s1 }
 0xd5b   :  { %724 = vrot.lane.b32.xlu0 %v720_v56, %s1544_s1 }
 0xdcc   :  { %v727_v58 = vpop.permute.xlu1 %726 }
 0xdcd   :  { %v725_v57 = vpop.permute.xlu0 %724 }
 0xdce   :  { %1322 = vmatprep.mubr.msk.f32.mxu1 %vm15_vm0, %v725_v57 }
 0xdcf   :  { %1323 = vmatmul.mubr.msk.f32.vlgmr.msra.gmra.mrb[4].mxu1 %vm15_vm0, %v727_v58 }
 0xdd0   :  { %1406 = vmatpush3.bf16.msra.mxu1 %v1575_v4 }
 0xdd1   :  { %1408 = vmatprep.subr.bf16.mxu1 %v1580_v6 }
 0xdd4   :  { %1410 = vmatpush3.bf16.msra.mxu1 %v1580_v6 }
 0xea2   :  { %v1324_v61 = vpop.f32.mrb[4].mxu1 }
 0xea3   :  { %v811_v62 = vadd.f32 %v1324_v61, %v1196_v59  ;;  %v798_v63 = vpop.f32.mrb[5].mxu1 }
 0xea4   :  { %v810_v0 = vadd.f32 %v1195_v60, %v798_v63  ;;  %v1208_v63 = vld [vmem:[%s1757_s0 + $0x78] sm:$0xff] }
 0xea5   :  { %1495 = vtanh.f32 %v811_v62  ;;  %v1198_v6 = vmul.f32 -1.442695, %v811_v62 }
 0xea6   :  { %1497 = vtanh.f32 %v810_v0  ;;  %v1197_v2 = vmul.f32 -1.442695, %v810_v0  ;;  %v1207_v0 = vld [vmem:[%s1757_s0 + $0x70] sm:$0xff]  ;;  %s1546_s0 = smov 96  }
 0xea7   :  { %1499 = vpow2.f32 %v1198_v6 }
 0xea8   :  { %1501 = vpow2.f32 %v1197_v2 }
 0xeaf   :  { %v1496_v1 = vpop.eup %1495 }
 0xeb0   :  { %v1498_v4 = vpop.eup %1497  ;;  %832 = vrot.lane.b32.xlu1 %v1496_v1, %s1545_s21 }
 0xeb1   :  { %830 = vrot.lane.b32.xlu0 %v1498_v4, %s1545_s21  ;;  %v1500_v3 = vpop.eup %1499 }
 0xeb2   :  { %v1502_v5 = vpop.eup %1501  ;;  %v819_v7 = vadd.f32 1.0, %v1500_v3 }
 0xeb3   :  { %v818_v8 = vadd.f32 1.0, %v1502_v5 }
 0xeb4   :  { %1503 = vrcp.f32 %v819_v7 }
 0xeb5   :  { %1505 = vrcp.f32 %v818_v8 }
 0xebe   :  { %v1504_v9 = vpop.eup %1503 }
 0xebf   :  { %v1506_v11 = vpop.eup %1505  ;;  %v827_v15 = vmul.f32 %v1504_v9, %v709_v48 }
 0xec0   :  { %v826_v17 = vmul.f32 %v1506_v11, %v708_v50 }
 0xf22   :  { %v833_v10 = vpop.permute.xlu1 %832 }
 0xf23   :  { %v837_v12 = vmul.f32 %v1504_v9, %v833_v10  ;;  %v831_v13 = vpop.permute.xlu0 %830 }
 0xf24   :  { %v836_v14 = vmul.f32 %v1506_v11, %v831_v13 }
 0xf25   :  { %842 = vrot.lane.b32.xlu1 %v837_v12, %s1544_s1 }
 0xf26   :  { %840 = vrot.lane.b32.xlu0 %v836_v14, %s1544_s1 }
 0xf97   :  { %v843_v16 = vpop.permute.xlu1 %842 }
 0xf98   :  { %v847_v18 = vadd.f32 %v843_v16, %v827_v15  ;;  %v841_v19 = vpop.permute.xlu0 %840 }
 0xf99   :  { %v846_v20 = vadd.f32 %v841_v19, %v826_v17 }
 0xf9a   :  { %1507 = vtanh.f32 %v847_v18 }
 0xf9b   :  { %1509 = vtanh.f32 %v846_v20 }
 0xfa4   :  { %v1508_v21 = vpop.eup %1507 }
 0xfa5   :  { %v1510_v22 = vpop.eup %1509  ;;  %854 = vrot.lane.b32.xlu1 %v1508_v21, %s1545_s21 }
 0xfa6   :  { %852 = vrot.lane.b32.xlu0 %v1510_v22, %s1545_s21 }
0x1017   :  { %v855_v23 = vpop.permute.xlu1 %854 }
0x1018   :  { %v859_v24 = vmul.f32 %v1504_v9, %v855_v23  ;;  %v853_v25 = vpop.permute.xlu0 %852 }
0x1019   :  { %v858_v26 = vmul.f32 %v1506_v11, %v853_v25 }
0x101a   :  { %864 = vrot.lane.b32.xlu1 %v859_v24, %s1544_s1 }
0x101b   :  { %862 = vrot.lane.b32.xlu0 %v858_v26, %s1544_s1 }
0x108c   :  { %v865_v28 = vpop.permute.xlu1 %864 }
0x108d   :  { %v863_v27 = vpop.permute.xlu0 %862 }
0x108e   :  { %1333 = vmatprep.mubr.msk.f32.mxu0 %vm15_vm0, %v863_v27 }
0x108f   :  { %1334 = vmatmul.mubr.msk.f32.vlgmr.msra.gmra.mrb[6].mxu0 %vm15_vm0, %v865_v28 }
0x1162   :  { %v1335_v31 = vpop.f32.mrb[6].mxu0 }
0x1163   :  { %v949_v32 = vadd.f32 %v1335_v31, %v1202_v29  ;;  %v936_v33 = vpop.f32.mrb[7].mxu0 }
0x1164   :  { %v948_v34 = vadd.f32 %v1201_v30, %v936_v33 }
0x1165   :  { %1511 = vtanh.f32 %v949_v32  ;;  %v1204_v37 = vmul.f32 -1.442695, %v949_v32 }
0x1166   :  { %1513 = vtanh.f32 %v948_v34  ;;  %v1203_v38 = vmul.f32 -1.442695, %v948_v34 }
0x1167   :  { %1515 = vpow2.f32 %v1204_v37 }
0x1168   :  { %1517 = vpow2.f32 %v1203_v38 }
0x116f   :  { %v1512_v35 = vpop.eup %1511 }
0x1170   :  { %v1514_v36 = vpop.eup %1513  ;;  %970 = vrot.lane.b32.xlu1 %v1512_v35, %s1545_s21 }
0x1171   :  { %968 = vrot.lane.b32.xlu0 %v1514_v36, %s1545_s21  ;;  %v1516_v39 = vpop.eup %1515 }
0x1172   :  { %v1518_v40 = vpop.eup %1517  ;;  %v957_v41 = vadd.f32 1.0, %v1516_v39 }
0x1173   :  { %v956_v42 = vadd.f32 1.0, %v1518_v40 }
0x1174   :  { %1519 = vrcp.f32 %v957_v41 }
0x1175   :  { %1521 = vrcp.f32 %v956_v42 }
0x117e   :  { %v1520_v43 = vpop.eup %1519 }
0x117f   :  { %v1522_v45 = vpop.eup %1521  ;;  %v965_v49 = vmul.f32 %v1520_v43, %v847_v18 }
0x1180   :  { %v964_v51 = vmul.f32 %v1522_v45, %v846_v20 }
0x11e2   :  { %v971_v44 = vpop.permute.xlu1 %970 }
0x11e3   :  { %v975_v46 = vmul.f32 %v1520_v43, %v971_v44  ;;  %v969_v47 = vpop.permute.xlu0 %968 }
0x11e4   :  { %v974_v48 = vmul.f32 %v1522_v45, %v969_v47 }
0x11e5   :  { %980 = vrot.lane.b32.xlu1 %v975_v46, %s1544_s1 }
0x11e6   :  { %978 = vrot.lane.b32.xlu0 %v974_v48, %s1544_s1 }
0x1257   :  { %v981_v50 = vpop.permute.xlu1 %980 }
0x1258   :  { %v985_v52 = vadd.f32 %v981_v50, %v965_v49  ;;  %v979_v53 = vpop.permute.xlu0 %978 }
0x1259   :  { %v984_v54 = vadd.f32 %v979_v53, %v964_v51 }
0x125a   :  { %1523 = vtanh.f32 %v985_v52 }
0x125b   :  { %1525 = vtanh.f32 %v984_v54 }
0x1264   :  { %v1524_v55 = vpop.eup %1523 }
0x1265   :  { %v1526_v56 = vpop.eup %1525  ;;  %992 = vrot.lane.b32.xlu1 %v1524_v55, %s1545_s21 }
0x1266   :  { %990 = vrot.lane.b32.xlu0 %v1526_v56, %s1545_s21 }
0x12d7   :  { %v993_v57 = vpop.permute.xlu1 %992 }
0x12d8   :  { %v997_v58 = vmul.f32 %v1520_v43, %v993_v57  ;;  %v991_v59 = vpop.permute.xlu0 %990 }
0x12d9   :  { %v996_v60 = vmul.f32 %v1522_v45, %v991_v59 }
0x12da   :  { %1002 = vrot.lane.b32.xlu1 %v997_v58, %s1544_s1 }
0x12db   :  { %1000 = vrot.lane.b32.xlu0 %v996_v60, %s1544_s1 }
0x134c   :  { %v1003_v62 = vpop.permute.xlu1 %1002 }
0x134d   :  { %v1001_v61 = vpop.permute.xlu0 %1000 }
0x134e   :  { %1344 = vmatprep.mubr.msk.f32.mxu1 %vm15_vm0, %v1001_v61 }
0x134f   :  { %1345 = vmatmul.mubr.msk.f32.vlgmr.msra.gmra.mrb[6].mxu1 %vm15_vm0, %v1003_v62 }
0x1422   :  { %v1346_v1 = vpop.f32.mrb[6].mxu1 }
0x1423   :  { %v1087_v4 = vadd.f32 %v1346_v1, %v1208_v63  ;;  %v1074_v6 = vpop.f32.mrb[7].mxu1 }
0x1424   :  { %v1086_v2 = vadd.f32 %v1207_v0, %v1074_v6 }
0x1425   :  { %1527 = vtanh.f32 %v1087_v4  ;;  %v1210_v7 = vmul.f32 -1.442695, %v1087_v4 }
0x1426   :  { %1529 = vtanh.f32 %v1086_v2  ;;  %v1209_v8 = vmul.f32 -1.442695, %v1086_v2 }
0x1427   :  { %1531 = vpow2.f32 %v1210_v7 }
0x1428   :  { %1533 = vpow2.f32 %v1209_v8 }
0x142f   :  { %v1528_v3 = vpop.eup %1527 }
0x1430   :  { %v1530_v5 = vpop.eup %1529  ;;  %1108 = vrot.lane.b32.xlu1 %v1528_v3, %s1545_s21 }
0x1431   :  { %1106 = vrot.lane.b32.xlu0 %v1530_v5, %s1545_s21  ;;  %v1532_v9 = vpop.eup %1531 }
0x1432   :  { %v1534_v10 = vpop.eup %1533  ;;  %v1095_v11 = vadd.f32 1.0, %v1532_v9 }
0x1433   :  { %v1094_v12 = vadd.f32 1.0, %v1534_v10 }
0x1434   :  { %1535 = vrcp.f32 %v1095_v11 }
0x1435   :  { %1537 = vrcp.f32 %v1094_v12 }
0x143e   :  { %v1536_v13 = vpop.eup %1535 }
0x143f   :  { %v1538_v15 = vpop.eup %1537  ;;  %v1103_v19 = vmul.f32 %v1536_v13, %v985_v52 }
0x1440   :  { %v1102_v21 = vmul.f32 %v1538_v15, %v984_v54 }
0x14a2   :  { %v1109_v14 = vpop.permute.xlu1 %1108 }
0x14a3   :  { %v1113_v16 = vmul.f32 %v1536_v13, %v1109_v14  ;;  %v1107_v17 = vpop.permute.xlu0 %1106 }
0x14a4   :  { %v1112_v18 = vmul.f32 %v1538_v15, %v1107_v17 }
0x14a5   :  { %1118 = vrot.lane.b32.xlu1 %v1113_v16, %s1544_s1 }
0x14a6   :  { %1116 = vrot.lane.b32.xlu0 %v1112_v18, %s1544_s1 }
0x1517   :  { %v1119_v20 = vpop.permute.xlu1 %1118 }
0x1518   :  { %v1123_v22 = vadd.f32 %v1119_v20, %v1103_v19  ;;  %v1117_v23 = vpop.permute.xlu0 %1116 }
0x1519   :  { %v1122_v24 = vadd.f32 %v1117_v23, %v1102_v21 }
0x151a   :  { %1539 = vtanh.f32 %v1123_v22 }
0x151b   :  { %1541 = vtanh.f32 %v1122_v24 }
0x1524   :  { %v1540_v25 = vpop.eup %1539 }
0x1525   :  { %v1542_v26 = vpop.eup %1541  ;;  %1130 = vrot.lane.b32.xlu1 %v1540_v25, %s1545_s21 }
0x1526   :  { %1128 = vrot.lane.b32.xlu0 %v1542_v26, %s1545_s21 }
0x1597   :  { %v1131_v27 = vpop.permute.xlu1 %1130 }
0x1598   :  { %v1135_v28 = vmul.f32 %v1536_v13, %v1131_v27  ;;  %v1129_v29 = vpop.permute.xlu0 %1128 }
0x1599   :  { %v1134_v30 = vmul.f32 %v1538_v15, %v1129_v29 }
0x159a   :  { %1140 = vrot.lane.b32.xlu1 %v1135_v28, %s1544_s1 }
0x159b   :  { %1138 = vrot.lane.b32.xlu0 %v1134_v30, %s1544_s1 }
0x159e   :  { %1150 = vrot.lane.b32.xlu1 %v1123_v22, %s1546_s0 }
0x159f   :  { %1148 = vrot.lane.b32.xlu0 %v1122_v24, %s1546_s0 }
0x160c   :  { %v1141_v31 = vpop.permute.xlu1 %1140 }
0x160d   :  { %1145 = vst.msk [vmem:[#allocation2 + $0x8] sm:$0xff] %vm15_vm0, %v1141_v31  ;;  %1160 = vst.msk [vmem:[%s1758_s2 + $0x8] sm:$0xff] %vm15_vm0, %v1141_v31  ;;  %v1139_v32 = vpop.permute.xlu0 %1138 }
0x160e   :  { %1144 = vst.msk [vmem:[#allocation2] sm:$0xff] %vm15_vm0, %v1139_v32  ;;  %1159 = vst.msk [vmem:[%s1758_s2] sm:$0xff] %vm15_vm0, %v1139_v32 }
0x1610   :  { %v1151_v33 = vpop.permute.xlu1 %1150 }
0x1611   :  { %1155 = vst.msk [vmem:[#allocation3 + $0x8] sm:$0xff] %vm15_vm0, %v1151_v33  ;;  %v1149_v34 = vpop.permute.xlu0 %1148 }
0x1612   :  { %1154 = vst.msk [vmem:[#allocation3] sm:$0xff] %vm15_vm0, %v1149_v34 }

</bundles_post_ra>
